<compile_context>
chip_gen: v6e
topology: v6e:2x2x1
jax: 0.10.0
libtpu: 0.0.40
codegen_flags: <defaults>
</compile_context>

<pallas_src>
import functools

import jax
import jax.numpy as jnp
from jax.experimental import pallas as pl
from jax.experimental.pallas import tpu as pltpu


# ----------------------------- kernels -----------------------------

def _copy_row_kernel(x_ref, o_ref):
    # CLS: the BlockSpec index_map already selected row b*S; just copy it.
    o_ref[...] = x_ref[...]


def _sep_row_kernel(sep_ref, x_ref, o_ref):
    # SEP: gather is done entirely in the index_map via the SMEM-prefetched
    # sep indices; the kernel body is a copy.  (sep_ref unused here.)
    del sep_ref
    o_ref[...] = x_ref[...]


def _mean_kernel(x_ref, m_ref, o_ref, acc_ref, len_ref):
    s = pl.program_id(2)

    @pl.when(s == 0)
    def _():
        acc_ref[...] = jnp.zeros_like(acc_ref)
        len_ref[...] = jnp.zeros_like(len_ref)

    x = x_ref[...].astype(jnp.float32)            # (Bt, St, Ht)
    m = m_ref[...]                                # (Bt, St, 1) float32
    acc_ref[...] += jnp.sum(x * m, axis=1)        # (Bt, Ht) f32 accumulation
    len_ref[...] += jnp.sum(m, axis=1)            # (Bt, 1)

    @pl.when(s == pl.num_programs(2) - 1)
    def _():
        o_ref[...] = (acc_ref[...] *
                      pl.reciprocal(len_ref[...])).astype(o_ref.dtype)


def _sum_kernel(x_ref, m_ref, o_ref, acc_ref, len_ref):
    del len_ref
    s = pl.program_id(2)

    @pl.when(s == 0)
    def _():
        acc_ref[...] = jnp.zeros_like(acc_ref)

    x = x_ref[...].astype(jnp.float32)            # f32 accumulation
    acc_ref[...] += jnp.sum(x * m_ref[...], axis=1)

    @pl.when(s == pl.num_programs(2) - 1)
    def _():
        o_ref[...] = acc_ref[...].astype(o_ref.dtype)


def _max_kernel(x_ref, m_ref, o_ref, acc_ref, len_ref):
    del len_ref
    s = pl.program_id(2)

    @pl.when(s == 0)
    def _():
        acc_ref[...] = jnp.full_like(acc_ref, -jnp.inf)

    x = x_ref[...].astype(jnp.float32)
    m = m_ref[...]                                # (Bt, St, 1)
    # Module semantics: masked positions are set to -1000000.0 before the max.
    masked = jnp.where(m == 0.0, jnp.float32(-1000000.0), x)
    acc_ref[...] = jnp.maximum(acc_ref[...], jnp.max(masked, axis=1))

    @pl.when(s == pl.num_programs(2) - 1)
    def _():
        o_ref[...] = acc_ref[...].astype(o_ref.dtype)


_REDUCE_KERNELS = {"Mean": _mean_kernel, "Max": _max_kernel, "Sum": _sum_kernel}


# -------------------------- tiling helpers --------------------------

def _pick_divisor_tile(dim, candidates):
    for c in candidates:
        if c <= dim and dim % c == 0:
            return c
    return dim


def _reduce_tiles(B, S, H, itemsize):
    # Lane-dense H tile (multiple of 128 when possible); modest B tile;
    # full-S tile unless it would blow the VMEM budget, in which case S is
    # tiled and the kernel accumulates across the (last, "arbitrary") S axis.
    Ht = _pick_divisor_tile(H, (512, 256, 128))
    Bt = _pick_divisor_tile(B, (8, 4, 2))
    St = S

    def vmem_bytes(bt, st, ht):
        x_tile = bt * st * ht * itemsize
        # The (bt, st, 1) f32 mask tile pads its lane dim to 128 in VMEM.
        m_tile = bt * st * 128 * 4
        return 2 * (x_tile + m_tile)              # pipeline double-buffering

    budget = 6 * 1024 * 1024  # keep well inside v5e's 16 MiB scoped default
    while vmem_bytes(Bt, St, Ht) > budget and Ht % 256 == 0:
        Ht //= 2
    while vmem_bytes(Bt, St, Ht) > budget and St % 16 == 0:
        St //= 2
    while vmem_bytes(Bt, St, Ht) > budget and Bt % 2 == 0:
        Bt //= 2
    return Bt, St, Ht


# ----------------------------- wrapper -----------------------------

@functools.partial(jax.jit, static_argnames=("pooling_name",))
def non_parametric_pooling(x, attention_mask, pooling_name):
    B, S, H = x.shape

    if pooling_name in ("CLS", "SEP"):
        # Free reshape so the gathered row is a size-1 block on the leading
        # dim (last two block dims stay full -> layout-friendly on all chips).
        x3 = x.reshape(B * S, 1, H)
        out_shape = jax.ShapeDtypeStruct((B, 1, H), x.dtype)
        cparams = pltpu.CompilerParams(dimension_semantics=("parallel",))

        if pooling_name == "CLS":
            out3 = pl.pallas_call(
                _copy_row_kernel,
                out_shape=out_shape,
                grid=(B,),
                in_specs=[pl.BlockSpec((1, 1, H), lambda b: (b * S, 0, 0))],
                out_specs=pl.BlockSpec((1, 1, H), lambda b: (b, 0, 0)),
                compiler_params=cparams,
            )(x3)
        else:  # SEP
            # int32 index math outside the kernel (bf16-safe for any S).
            sep_idx = attention_mask.astype(jnp.int32).sum(axis=1) - 1  # (B,)
            grid_spec = pltpu.PrefetchScalarGridSpec(
                num_scalar_prefetch=1,
                grid=(B,),
                in_specs=[pl.BlockSpec(
                    (1, 1, H), lambda b, sep: (b * S + sep[b], 0, 0))],
                out_specs=pl.BlockSpec((1, 1, H), lambda b, sep: (b, 0, 0)),
            )
            out3 = pl.pallas_call(
                _sep_row_kernel,
                out_shape=out_shape,
                grid_spec=grid_spec,
                compiler_params=cparams,
            )(sep_idx, x3)
        return out3.reshape(B, H)

    if pooling_name not in _REDUCE_KERNELS:
        raise ValueError(f"No such a pooling name! {pooling_name}")

    kernel = _REDUCE_KERNELS[pooling_name]
    Bt, St, Ht = _reduce_tiles(B, S, H, x.dtype.itemsize)
    mask3 = attention_mask.astype(jnp.float32)[:, :, None]   # (B, S, 1)

    return pl.pallas_call(
        kernel,
        out_shape=jax.ShapeDtypeStruct((B, H), x.dtype),
        grid=(B // Bt, H // Ht, S // St),
        in_specs=[
            pl.BlockSpec((Bt, St, Ht), lambda b, h, s: (b, s, h)),
            pl.BlockSpec((Bt, St, 1), lambda b, h, s: (b, s, 0)),
        ],
        out_specs=pl.BlockSpec((Bt, Ht), lambda b, h, s: (b, h)),
        scratch_shapes=[
            pltpu.VMEM((Bt, Ht), jnp.float32),   # running sum / max
            pltpu.VMEM((Bt, 1), jnp.float32),    # running sent_len (Mean)
        ],
        compiler_params=pltpu.CompilerParams(
            dimension_semantics=("parallel", "parallel", "arbitrary")),
    )(x, mask3)


# -------------------------- pure-JAX reference --------------------------

def reference_pooling(x, attention_mask, pooling_name):
    if pooling_name == "CLS":
        return x[:, 0]
    m = attention_mask.astype(x.dtype)
    sent_len = m.sum(axis=1, keepdims=True)
    if pooling_name == "SEP":
        sep_idx = attention_mask.astype(jnp.int32).sum(axis=1) - 1
        return x[jnp.arange(x.shape[0]), sep_idx]
    mask_value = 0.0 if pooling_name in ("Mean", "Sum") else -1000000.0
    xm = jnp.where(m[:, :, None] == 0.0, mask_value, x)
    if pooling_name == "Mean":
        return xm.sum(axis=1) / sent_len
    if pooling_name == "Max":
        return xm.max(axis=1)
    if pooling_name == "Sum":
        return xm.sum(axis=1)
    raise ValueError(pooling_name)


# ------------------------------ main ------------------------------

def _run_case(key, B, S, H, atol, rtol):
    kx, kl = jax.random.split(key)
    x = jax.random.normal(kx, (B, S, H), dtype=jnp.float32)
    # Contiguous valid prefix per sequence (like real attention masks), len>=1.
    sent_lens = jax.random.randint(kl, (B,), 1, S + 1)
    attention_mask = (jnp.arange(S)[None, :] < sent_lens[:, None]).astype(jnp.int32)

    ok = True
    for name in ("CLS", "SEP", "Mean", "Max", "Sum"):
        out = jax.block_until_ready(non_parametric_pooling(x, attention_mask, name))
        ref = reference_pooling(x, attention_mask, name)
        if not jnp.allclose(out, ref, atol=atol, rtol=rtol):
            ok = False
            print(f"MISMATCH {name} (B={B}, S={S}, H={H}): max abs err "
                  f"{float(jnp.max(jnp.abs(out - ref)))}")
    return ok


if __name__ == "__main__":
    key = jax.random.PRNGKey(0)
    k_small, k_big = jax.random.split(key)

    # Small canonical shape from the module spec.
    ok = _run_case(k_small, B=2, S=8, H=32, atol=1e-5, rtol=1e-5)
    # Moderate shape exercising the tiled (B, H, S) grid and the S-axis
    # accumulator path (grid > 1 on the h and s axes); slightly looser
    # tolerance absorbs f32 reduction-order differences vs. the XLA reference.
    ok &= _run_case(k_big, B=2, S=4096, H=256, atol=1e-4, rtol=1e-4)

    if ok:
        print("KERNEL_OK")
</pallas_src>

<mosaic_0001>
module attributes {stable_mosaic.version = 11 : i64} {
  func.func @_copy_row_kernel(%arg0: i32, %arg1: memref<1x1x32xf32, #tpu.memory_space<vmem>>, %arg2: memref<1x1x32xf32, #tpu.memory_space<vmem>>) attributes {dimension_semantics = [#tpu.dimension_semantics<parallel>], iteration_bounds = array<i64: 2>, scalar_prefetch = 0 : i64, scratch_operands = 0 : i64, tpu.core_type = #tpu.core_type<tc>, window_params = [{transform_indices = @transform_0, window_bounds = array<i64: 1, 1, 32>}, {transform_indices = @transform_1, window_bounds = array<i64: 1, 1, 32>}]} {
    %c0 = arith.constant 0 : index
    %c0_0 = arith.constant 0 : index
    %c0_1 = arith.constant 0 : index
    %0 = vector.load %arg1[%c0, %c0_0, %c0_1] : memref<1x1x32xf32, #tpu.memory_space<vmem>>, vector<1x1x32xf32>
    %c0_2 = arith.constant 0 : index
    %c0_3 = arith.constant 0 : index
    %c0_4 = arith.constant 0 : index
    %1 = vector.load %arg2[%c0_2, %c0_3, %c0_4] : memref<1x1x32xf32, #tpu.memory_space<vmem>>, vector<1x1x32xf32>
    tpu.vector_store %arg2[%c0_2, %c0_3, %c0_4], %0 {strides = array<i32>} : memref<1x1x32xf32, #tpu.memory_space<vmem>>, vector<1x1x32xf32>,
    return
  }
  func.func @transform_0(%arg0: i32) -> (i32, i32, i32) {
    %c8_i32 = arith.constant 8 : i32
    %0 = arith.muli %arg0, %c8_i32 : i32
    %c0_i32 = arith.constant 0 : i32
    %c0_i32_0 = arith.constant 0 : i32
    %c0_i32_1 = arith.constant 0 : i32
    return %0, %c0_i32, %c0_i32_0 : i32, i32, i32
  }
  func.func @transform_1(%arg0: i32) -> (i32, i32, i32) {
    %c0_i32 = arith.constant 0 : i32
    %c0_i32_0 = arith.constant 0 : i32
    %c0_i32_1 = arith.constant 0 : i32
    return %arg0, %c0_i32, %c0_i32_0 : i32, i32, i32
  }
}

</mosaic_0001>

<bundles_post_ra>
// kernel: non_parametric_pooling.1
= control target key start
LH: loop header
LB: loop body
LE: loop exit
PB: predicated region body
PF: predicated region fallthrough
CT: control target
= control target key end

     0   :  { %6 = vsyncpa [#allocation3], 0  ;;  %s598_s0 = inlined_call_operand.hbm [shape: f32[16,1,32], index: 0, kind: input, shape index: {}]   ;;  %s599_s1 = inlined_call_operand.hbm [shape: f32[2,1,32], index: 1, kind: output, shape index: {}]  }
   0x1   :  { %8 = vsyncpa [#allocation3 + $0x1], 0 }
   0x2   :  { %9 = vsyncpa [#allocation4], 0 }
   0x3   :  { %11 = vsyncpa [#allocation4 + $0x1], 0  ;;  %s425_s6 = smov 0   ;;  %s427_s7 = smov 0  }
   0x4   :  { %s429_s8 = smov 0   ;;  %s431_s9 = smov 0  }
   0x5   :  { %s433_s10 = smov 0   ;;  %s435_s11 = smov 0  }
   0x6   :  { %s437_s12 = smov 0  }
   0x7 LB: > { %s459_s13 = sadd.s32 4294967295, %s411_s12   ;;  %s211_s14 = sadd.s32 4294967294, %s411_s12   ;;  %s411_s12 = sphi %s437_s12, %s619_s12   ;;  %s407_s11 = sphi %s435_s11, %s618_s11   ;;  %s403_s10 = sphi %s433_s10, %s617_s10   ;;  %s399_s9 = sphi %s431_s9, %s616_s9   ;;  %s395_s8 = sphi %s429_s8, %s615_s8   ;;  %s391_s7 = sphi %s427_s7, %s614_s7   ;;  %s387_s6 = sphi %s425_s6, %s613_s6  }
   0x8   : > { %s463_s15 = sadd.s32 1, %s411_s12   ;;  %s212_s16 = sshll.u32 %s411_s12, 3 }
   0x9   : > { %s223_s17 = sadd.s32 8, %s212_s16  ;;  %s26_s18 = sadd.s32 1, %s407_s11 }
   0xa   : > { %s23_s19 = ssub.s32 %s212_s16, %s223_s17  ;;  %p33_p0 = scmp.ne.s32.totalorder %s407_s11, %s403_s10 }
   0xb   : > { %p24_p1 = scmp.eq.s32.totalorder %s23_s19, 0  ;;  %p34_p2 = scmp.eq.s32.totalorder %s411_s12, 0 }
   0xc   : > { %p39_p3 = scmp.ne.s32.totalorder %s403_s10, %s399_s9  ;;  %p40_p4 = scmp.eq.s32.totalorder %s459_s13, 0 }
   0xd   : > { %s473_s20 = scalar_select %p24_p1, %s407_s11, %s26_s18  }
   0xe   : > { %p475_p5 = por %p34_p2, %p33_p0  ;;  %p479_p6 = por %p40_p4, %p39_p3 }
   0xf   : > { %s49_s23 = ssub.s32 %s411_s12, %s463_s15  ;;  %s52_s24 = sadd.s32 1, %s395_s8 }
  0x10   : > { %s603_s22 = scalar_select %p479_p6, 1, 0 }
  0x11   : > { %p50_p7 = scmp.eq.s32.totalorder %s49_s23, 0  ;;  %p62_p8 = scmp.ne.s32.totalorder %s395_s8, %s391_s7 }
  0x12   : > { %p63_p9 = scmp.eq.s32.totalorder %s459_s13, 1  ;;  %p68_p10 = scmp.ne.s32.totalorder %s391_s7, %s387_s6 }
  0x13   : > { %s492_s25 = scalar_select %p50_p7, %s395_s8, %s52_s24  }
  0x14   : > { %p494_p11 = por %p63_p9, %p62_p8  ;;  %p69_p12 = scmp.eq.s32.totalorder %s211_s14, 1 }
  0x15   : > { %p237_p0 = scmp.lt.s32.totalorder %s411_s12, 2  ;;  %s89_s28 = sand.u32 1, %s407_s11  }
  0x16   : > { %s604_s26 = scalar_select %p494_p11, 1, 0 }
  0x17   : > { %p500_p1 = por %p69_p12, %p68_p10  ;;  %s224_s29 = sshll.u32 %s411_s12, 7 }
  0x18   : > { %s92_s30 = scalar_lea.vmem [#allocation2], %s89_s28  ;;  %s509_s5 = scalar_lea.hbm %s598_s0, %s224_s29 }
  0x19   : > { %s605_s27 = scalar_select %p500_p1, 1, 0 }
  0x1a   : > { %s100_s2 = sshll.u32 %s92_s30, 4  ;;  %p515_p2 = pnand %p237_p0, %p475_p5  ;;  %s511_s2 = int_to_ptr.vmem [resolvable:$true] %s100_s2 }
  0x1b   : > { %s90_s14 = scalar_lea.sflag [#allocation3], %s89_s28  ;;  %s295_s16 = scalar_lea.hbm %s509_s5, 16 }
  0x1c   : > { %p296_p7 = scmp.ne.s32.totalorder %s509_s5, %s295_s16  ;;  %p297_p8 = pneg %p515_p2 }
  0x1d   : > { %s300_s19 = scalar_lea.hbm %s598_s0, 256  ;;  %p301_p5 = scmp.lt.s32.totalorder %s509_s5, %s598_s0 }
  0x1e   : > { %p298_p9 = pnand %p297_p8, %p296_p7  ;;  %p302_p12 = scmp.lt.s32.totalorder %s300_s19, %s295_s16 }
  0x20   : > { %p299_p10 = pneg %p298_p9  ;;  %p303_p0 = por %p302_p12, %p301_p5 }
  0x22   : > { %p304_p13 = pnand %p303_p0, %p299_p10 }
  0x24   : > { %307 = shalt.err (!%p304_p13)
}
  0x25   : > { %s308_s24 = scalar_lea.vmem %s511_s2, 16  ;;  %s413_s28 = smov [#allocation2]  }
  0x26   : > { %p309_p3 = scmp.ne.s32.totalorder %s511_s2, %s308_s24  ;;  %s313_s29 = sshll.u32 %s413_s28, 4  ;;  %s314_s29 = int_to_ptr.vmem [resolvable:$false] %s313_s29 }
  0x27   : > { %s315_s30 = scalar_lea.vmem %s314_s29, 32  ;;  %p316_p9 = scmp.lt.s32.totalorder %s511_s2, %s314_s29 }
  0x28   : > { %p311_p4 = pnand %p309_p3, %p297_p8  ;;  %p317_p1 = scmp.lt.s32.totalorder %s315_s30, %s308_s24 }
  0x2a   : > { %p312_p7 = pneg %p311_p4  ;;  %p318_p11 = por %p317_p1, %p316_p9 }
  0x2c   : > { %p319_p6 = pnand %p318_p11, %p312_p7 }
  0x2e   : > { %322 = shalt.err (!%p319_p6)
}
  0x2f   : > { %232 = dma.hbm_to_vmem [thread:$0]  (!%p515_p2), %s509_s5, 16, %s511_s2, %s90_s14  }
  0x30   : > { %p607_p13 = scmp.lt.s32.totalorder %s411_s12, 3  ;;  %p608_p10 = scmp.ge.s32.totalorder %s411_s12, 1 }
  0x32   : > { %p106_p3 = pnand %p608_p10, %p607_p13 }
  0x33   : > { %s111_s3 = sand.u32 (!%p106_p3), 1, %s403_s10   ;;  %p609_p4 = scmp.ne.s32.totalorder (!%p106_p3), %s603_s22, 0 }
  0x34   : > { %109 = sbr.rel (%p106_p3) target bundleno = 83 (0x53), region = 24  ;;  %s112_s4 = scalar_lea.sflag (!%p106_p3), [#allocation3], %s111_s3 }
  0x35   : > { %s114_s16 = scalar_lea.vmem (!%p106_p3), [#allocation2], %s111_s3 }
  0x39   : > { %378 = dma.done.wait (%p609_p4), %s112_s4, 16  }
  0x3a   : > { %380 = vsyncadd (%p609_p4), %s112_s4, 4294967280  ;;  %s129_s9 = sand.u32 1, %s391_s7   ;;  %s219_s5 = sshll.u32 %s459_s13, 4  ;;  %vm133_vm0 = vcmask 253952   ;;  %v132_v0 = vld [vmem:[%s114_s16] sm:$0x1] }
  0x3b   : > { %s130_s17 = scalar_lea.vmem [#allocation5], %s129_s9  ;;  %s146_s19 = scalar_lea.hbm %s599_s1, %s219_s5 }
  0x3c   : > { %s148_s2 = sshll.u32 %s130_s17, 4  ;;  %134 = vst.msk [vmem:[%s130_s17] sm:$0x1] %vm133_vm0, %v132_v0  ;;  %s136_s22 = scalar_lea.sflag [#allocation4], %s129_s9  ;;  %s550_s2 = int_to_ptr.vmem [resolvable:$true] %s148_s2 }
  0x3d   : > { %s323_s23 = scalar_lea.vmem %s550_s2, 16  ;;  %p610_p11 = scmp.ne.s32.totalorder %s604_s26, 0 }
  0x3e   : > { %p324_p6 = scmp.ne.s32.totalorder %s550_s2, %s323_s23  ;;  %s414_s21 = smov [#allocation5]  }
  0x3f   : > { %s327_s13 = sshll.u32 %s414_s21, 4  ;;  %s328_s13 = int_to_ptr.vmem [resolvable:$false] %s327_s13 }
  0x40   : > { %p325_p1 = pnand %p324_p6, %p610_p11  ;;  %s329_s24 = scalar_lea.vmem %s328_s13, 32 }
  0x41   : > { %p330_p8 = scmp.lt.s32.totalorder %s550_s2, %s328_s13  ;;  %p331_p5 = scmp.lt.s32.totalorder %s329_s24, %s323_s23 }
  0x42   : > { %p326_p2 = pneg %p325_p1 }
  0x43   : > { %p332_p12 = por %p331_p5, %p330_p8 }
  0x45   : > { %p333_p0 = pnand %p332_p12, %p326_p2 }
  0x47   : > { %336 = shalt.err (!%p333_p0)
}
  0x48   : > { %s337_s28 = scalar_lea.hbm %s146_s19, 16  ;;  %s341_s3 = scalar_lea.hbm %s599_s1, 32 }
  0x49   : > { %p338_p7 = scmp.ne.s32.totalorder %s146_s19, %s337_s28  ;;  %p342_p10 = scmp.lt.s32.totalorder %s146_s19, %s599_s1 }
  0x4a   : > { %p343_p3 = scmp.lt.s32.totalorder %s341_s3, %s337_s28 }
  0x4b   : > { %p339_p9 = pnand %p338_p7, %p610_p11 }
  0x4c   : > { %p344_p4 = por %p343_p3, %p342_p10 }
  0x4d   : > { %p340_p13 = pneg %p339_p9 }
  0x4f   : > { %p345_p6 = pnand %p344_p4, %p340_p13 }
  0x51   : > { %348 = shalt.err (!%p345_p6)
}
  0x52   : > { %227 = dma.vmem_to_hbm [thread:$0]  (%p610_p11), %s550_s2, 16, %s146_s19, %s136_s22  }
  0x53 PF: > { %s160_s9 = sand.u32 1, %s387_s6   ;;  %p611_p1 = scmp.ne.s32.totalorder %s605_s27, 0 }
  0x54   : > { %p612_p2 = scmp.ge.s32.totalorder %s411_s12, 2  ;;  %s161_s17 = scalar_lea.sflag [#allocation4], %s160_s9 }
  0x56   : > { %p234_p8 = pnand %p612_p2, %p611_p1 }
  0x58   : > { %p235_p5 = pneg %p234_p8 }
  0x5a   : > { %382 = dma.done.wait (%p235_p5), %s161_s17, 16  }
  0x5b   : > { %384 = vsyncadd (%p235_p5), %s161_s17, 4294967280  ;;  %p14_p11 = scmp.ge.s32.totalorder %s463_s15, 4   ;;  %s613_s6 = smov %s391_s7 }
  0x5c   : > { %s614_s7 = smov %s395_s8  ;;  %s615_s8 = smov %s492_s25 }
  0x5d   : > { %s616_s9 = smov %s403_s10  ;;  %s617_s10 = smov %s407_s11 }
  0x5e   : > { %s618_s11 = smov %s473_s20  ;;  %s619_s12 = smov %s463_s15 }
  0x5f   :  { %16 = sbr.rel (!%p14_p11) target bundleno = 7 (0x7), region = 69 }
  0x64   :  { %165 = vsyncpa [#allocation3], 1 }
  0x65   :  { %167 = vsyncpa [#allocation3 + $0x1], 1 }
  0x66   :  { %168 = vsyncpa [#allocation4], 1 }
  0x67   :  { %170 = vsyncpa [#allocation4 + $0x1], 1 }

</bundles_post_ra>
